<compile_context>
chip_gen: v6e
topology: v6e:2x2x1
jax: 0.10.0
libtpu: 0.0.40
codegen_flags: <defaults>
</compile_context>

<pallas_src>
import functools

import jax
import jax.numpy as jnp
from jax.experimental import pallas as pl
from jax.experimental.pallas import tpu as pltpu

LANES = 128
# 4096 rows * 128 lanes * 4 B = 2 MiB per f32 input block; 2 inputs x 2 pipeline
# buffers = 8 MiB VMEM, inside the default scoped limit on v5e (16 MiB),
# v6e (32 MiB) and v7x (32 MiB default / 64 MiB physical).
MAX_TILE_ROWS = 4096


def _tile_loss(pred_ref, true_ref):
    """Elementwise, numerically-stable BCE-with-logits on the current tile (f32)."""
    x = pred_ref[...].astype(jnp.float32)
    y = true_ref[...].astype(jnp.float32)
    # PyTorch's stable formulation: max(x, 0) - x*y + log(1 + exp(-|x|))
    return jnp.maximum(x, 0.0) - x * y + jnp.log1p(jnp.exp(-jnp.abs(x)))


def _bce_kernel(tile_rows, rows, last_partial, pred_ref, true_ref, out_ref):
    """Per-grid-step BCE partial sums.

    pred_ref: VMEM (tile_rows, 128) logits  (native dtype, cast in-register)
    true_ref: VMEM (tile_rows, 128) targets (native dtype, cast in-register)
    out_ref : VMEM (1, 128) f32 lane-partial sums for this tile

    `tile_rows`, `rows`, `last_partial` are baked-in Python constants.
    The elementwise math and the sublane reduce live in the same region
    (inside each pl.when body) so the full loss tile is never materialized
    across an scf.if boundary.
    """
    if not last_partial:
        # Every tile covers valid rows only: fused elementwise + reduce, no mask.
        out_ref[...] = jnp.sum(_tile_loss(pred_ref, true_ref), axis=0, keepdims=True)
    else:
        i = pl.program_id(0)
        last = pl.num_programs(0) - 1

        @pl.when(i != last)
        def _():
            # Interior tiles: unmasked fast path.
            out_ref[...] = jnp.sum(
                _tile_loss(pred_ref, true_ref), axis=0, keepdims=True
            )

        @pl.when(i == last)
        def _():
            # Last tile overhangs the array: rows past the end contain
            # unspecified data (possibly NaN when viewed as float) -> mask by
            # row index before reducing.  jnp.where is a select, so NaNs in the
            # masked-off rows do not propagate.
            loss = _tile_loss(pred_ref, true_ref)
            row = jax.lax.broadcasted_iota(jnp.int32, loss.shape, 0)
            valid = row < (rows - i * tile_rows)
            out_ref[...] = jnp.sum(
                jnp.where(valid, loss, 0.0), axis=0, keepdims=True
            )


def bce_with_logits(y_pred: jax.Array, y_true: jax.Array, *,
                    max_tile_rows: int = MAX_TILE_ROWS) -> jax.Array:
    """Pallas-backed equivalent of BCEWithLogits.forward (mean reduction)."""
    # torch's y_pred.squeeze(): drop all size-1 dims.
    y_pred = jnp.squeeze(y_pred)
    assert y_pred.shape == y_true.shape, (
        f"input shape {y_pred.shape} isn't same as gt shape {y_true.shape}"
    )
    # (torch casts y_true to y_pred.dtype here; the kernel casts both inputs to
    #  f32 in-register instead, so no wrapper-side astype / extra HBM pass.)

    n = int(y_pred.size)
    pred_flat = jnp.ravel(y_pred)  # contiguous reshape: free, stays in native dtype
    true_flat = jnp.ravel(y_true)

    rows = n // LANES
    rem = n - rows * LANES

    total = jnp.float32(0.0)

    if rows > 0:
        if rem:
            # 128-aligned prefix goes through the kernel; the <128-elem tail is
            # handled below with plain jnp (cheaper than padding both arrays).
            pred_2d = pred_flat[: rows * LANES].reshape(rows, LANES)
            true_2d = true_flat[: rows * LANES].reshape(rows, LANES)
        else:
            # Aligned case: pure metadata reshape, zero extra HBM traffic.
            pred_2d = pred_flat.reshape(rows, LANES)
            true_2d = true_flat.reshape(rows, LANES)

        tile_rows = rows if rows <= max_tile_rows else max_tile_rows
        num_tiles = pl.cdiv(rows, tile_rows)
        last_partial = (rows % tile_rows) != 0

        partials = pl.pallas_call(
            functools.partial(_bce_kernel, tile_rows, rows, last_partial),
            out_shape=jax.ShapeDtypeStruct((num_tiles, LANES), jnp.float32),
            grid_spec=pl.GridSpec(
                grid=(num_tiles,),
                in_specs=[
                    pl.BlockSpec((tile_rows, LANES), lambda i: (i, 0)),
                    pl.BlockSpec((tile_rows, LANES), lambda i: (i, 0)),
                ],
                out_specs=pl.BlockSpec((1, LANES), lambda i: (i, 0)),
            ),
            compiler_params=pltpu.CompilerParams(
                dimension_semantics=("parallel",),  # megacore-shardable on v7x
            ),
        )(pred_2d, true_2d)

        # Single cheap cross-lane / cross-tile reduce in the wrapper.
        total = total + jnp.sum(partials)

    if rem:
        # <128-element tail: trivial elementwise + reduce in plain jnp.
        xt = pred_flat[rows * LANES:].astype(jnp.float32)
        yt = true_flat[rows * LANES:].astype(jnp.float32)
        tail = jnp.maximum(xt, 0.0) - xt * yt + jnp.log1p(jnp.exp(-jnp.abs(xt)))
        total = total + jnp.sum(tail)

    return total * (1.0 / n)


def _reference_bce(y_pred, y_true):
    """Pure-JAX reference for correctness checking."""
    x = jnp.squeeze(y_pred).astype(jnp.float32)
    y = y_true.astype(jnp.float32)
    loss = jnp.maximum(x, 0.0) - x * y + jnp.log1p(jnp.exp(-jnp.abs(x)))
    return jnp.mean(loss)


if __name__ == "__main__":
    key = jax.random.PRNGKey(0)
    k1, k2, k3, k4, k5, k6 = jax.random.split(key, 6)

    # Test 1: lane-aligned N (everything goes through the kernel, no tail path).
    N1 = 1024
    y_pred1 = jax.random.normal(k1, (N1, 1), dtype=jnp.float32)
    y_true1 = jax.random.bernoulli(k2, 0.5, (N1,)).astype(jnp.float32)
    loss1 = jax.block_until_ready(bce_with_logits(y_pred1, y_true1))
    ref1 = jax.block_until_ready(_reference_bce(y_pred1, y_true1))
    assert jnp.allclose(loss1, ref1, atol=1e-5, rtol=1e-5), (loss1, ref1)

    # Test 2: unaligned N -> 128-aligned prefix through the kernel + jnp tail.
    N2 = 1000
    y_pred2 = jax.random.normal(k3, (N2, 1), dtype=jnp.float32)
    y_true2 = jax.random.bernoulli(k4, 0.5, (N2,)).astype(jnp.float32)
    loss2 = jax.block_until_ready(bce_with_logits(y_pred2, y_true2))
    ref2 = jax.block_until_ready(_reference_bce(y_pred2, y_true2))
    assert jnp.allclose(loss2, ref2, atol=1e-5, rtol=1e-5), (loss2, ref2)

    # Test 3: small tile override to exercise multi-tile grid + masked partial
    # last tile (rows=15, tile_rows=8 -> 2 tiles, last tile has 7 valid rows).
    N3 = 2000
    y_pred3 = jax.random.normal(k5, (N3, 1), dtype=jnp.float32)
    y_true3 = jax.random.bernoulli(k6, 0.5, (N3,)).astype(jnp.float32)
    loss3 = jax.block_until_ready(bce_with_logits(y_pred3, y_true3, max_tile_rows=8))
    ref3 = jax.block_until_ready(_reference_bce(y_pred3, y_true3))
    assert jnp.allclose(loss3, ref3, atol=1e-5, rtol=1e-5), (loss3, ref3)

    print("KERNEL_OK")
</pallas_src>

<mosaic_0001>
module attributes {stable_mosaic.version = 11 : i64} {
  func.func @_bce_kernel(%arg0: i32, %arg1: memref<8x128xf32, #tpu.memory_space<vmem>>, %arg2: memref<8x128xf32, #tpu.memory_space<vmem>>, %arg3: memref<1x128xf32, #tpu.memory_space<vmem>>) attributes {dimension_semantics = [#tpu.dimension_semantics<parallel>], iteration_bounds = array<i64: 1>, scalar_prefetch = 0 : i64, scratch_operands = 0 : i64, tpu.core_type = #tpu.core_type<tc>, window_params = [{transform_indices = @transform_0, window_bounds = array<i64: 8, 128>}, {transform_indices = @transform_1, window_bounds = array<i64: 8, 128>}, {transform_indices = @transform_2, window_bounds = array<i64: 1, 128>}]} {
    %c0 = arith.constant 0 : index
    %c0_0 = arith.constant 0 : index
    %0 = vector.load %arg1[%c0, %c0_0] : memref<8x128xf32, #tpu.memory_space<vmem>>, vector<8x128xf32>
    %c0_1 = arith.constant 0 : index
    %c0_2 = arith.constant 0 : index
    %1 = vector.load %arg2[%c0_1, %c0_2] : memref<8x128xf32, #tpu.memory_space<vmem>>, vector<8x128xf32>
    %cst = arith.constant 0.000000e+00 : f32
    %2 = vector.broadcast %cst : f32 to vector<8x128xf32>
    %3 = arith.maximumf %0, %2 : vector<8x128xf32>
    %4 = arith.mulf %0, %1 : vector<8x128xf32>
    %5 = arith.subf %3, %4 : vector<8x128xf32>
    %6 = math.absf %0 : vector<8x128xf32>
    %cst_3 = arith.constant 0.000000e+00 : f32
    %7 = vector.broadcast %cst_3 : f32 to vector<8x128xf32>
    %8 = arith.subf %7, %6 : vector<8x128xf32>
    %9 = math.exp %8 : vector<8x128xf32>
    %10 = math.log1p %9 : vector<8x128xf32>
    %11 = arith.addf %5, %10 : vector<8x128xf32>
    %cst_4 = arith.constant dense<0.000000e+00> : vector<128xf32>
    %12 = vector.multi_reduction <add>, %11, %cst_4 [0] : vector<8x128xf32> to vector<128xf32>
    %13 = vector.shape_cast %12 : vector<128xf32> to vector<1x128xf32>
    %c0_5 = arith.constant 0 : index
    %c0_6 = arith.constant 0 : index
    %14 = vector.load %arg3[%c0_5, %c0_6] : memref<1x128xf32, #tpu.memory_space<vmem>>, vector<1x128xf32>
    tpu.vector_store %arg3[%c0_5, %c0_6], %13 {strides = array<i32>} : memref<1x128xf32, #tpu.memory_space<vmem>>, vector<1x128xf32>,
    return
  }
  func.func @transform_0(%arg0: i32) -> (i32, i32) {
    %c0_i32 = arith.constant 0 : i32
    %c0_i32_0 = arith.constant 0 : i32
    return %arg0, %c0_i32 : i32, i32
  }
  func.func @transform_1(%arg0: i32) -> (i32, i32) {
    %c0_i32 = arith.constant 0 : i32
    %c0_i32_0 = arith.constant 0 : i32
    return %arg0, %c0_i32 : i32, i32
  }
  func.func @transform_2(%arg0: i32) -> (i32, i32) {
    %c0_i32 = arith.constant 0 : i32
    %c0_i32_0 = arith.constant 0 : i32
    return %arg0, %c0_i32 : i32, i32
  }
}

</mosaic_0001>

<bundles_post_ra>
// kernel: tpu_custom_call.1
= control target key start
LH: loop header
LB: loop body
LE: loop exit
PB: predicated region body
PF: predicated region fallthrough
CT: control target
= control target key end

     0   :  { %7 = vsyncpa [#allocation3], 0  ;;  %s178_s0 = inlined_call_operand.hbm [shape: f32[8,128], index: 0, kind: input, shape index: {}]   ;;  %s179_s1 = inlined_call_operand.hbm [shape: f32[8,128], index: 1, kind: input, shape index: {}]   ;;  %s180_s2 = inlined_call_operand.hbm [shape: f32[1,128], index: 2, kind: output, shape index: {}]  }
   0x1   :  { %8 = vsyncpa [#allocation6], 0 }
   0x2   :  { %9 = vsyncpa [#allocation4], 0  ;;  %s151_s9 = smov [#allocation2]   ;;  %s152_s11 = smov [#allocation5]  }
   0x3   :  { %s16_s10 = sshll.u32 %s151_s9, 4  ;;  %s26_s12 = sshll.u32 %s152_s11, 4  ;;  %s17_s10 = int_to_ptr.vmem [resolvable:$true] %s16_s10  ;;  %s27_s12 = int_to_ptr.vmem [resolvable:$true] %s26_s12 }
   0x4   :  { %s93_s13 = scalar_lea.vmem %s17_s10, 128  ;;  %p98_p1 = scmp.lt.s32.totalorder %s17_s10, %s17_s10 }
   0x5   :  { %p94_p0 = scmp.ne.s32.totalorder %s17_s10, %s93_s13  ;;  %p99_p2 = scmp.lt.s32.totalorder %s93_s13, %s93_s13 }
   0x7   :  { %p100_p3 = por %p99_p2, %p98_p1 }
   0x9   :  { %p101_p4 = pnand %p100_p3, %p94_p0 }
   0xb   :  { %104 = shalt.err (!%p101_p4)
}
   0xc   :  { %19 = dma.hbm_to_vmem [thread:$0]  %s178_s0, 128, %s17_s10, [#allocation3]  }
   0xd   :  { %s113_s16 = scalar_lea.vmem %s27_s12, 128  ;;  %p118_p6 = scmp.lt.s32.totalorder %s27_s12, %s27_s12 }
   0xe   :  { %p114_p5 = scmp.ne.s32.totalorder %s27_s12, %s113_s16  ;;  %p119_p7 = scmp.lt.s32.totalorder %s113_s16, %s113_s16 }
  0x10   :  { %p120_p8 = por %p119_p7, %p118_p6 }
  0x12   :  { %p121_p9 = pnand %p120_p8, %p114_p5 }
  0x14   :  { %124 = shalt.err (!%p121_p9)
}
  0x15   :  { %29 = dma.hbm_to_vmem [thread:$0]  %s179_s1, 128, %s27_s12, [#allocation6]  }
  0x16   :  { %145 = dma.done.wait [#allocation3], 128  }
  0x17   :  { %146 = vsyncadd [#allocation3], 4294967168 }
  0x18   :  { %147 = dma.done.wait [#allocation6], 128  }
  0x19   :  { %148 = vsyncadd [#allocation6], 4294967168  ;;  %v36_v0 = vld [vmem:[#allocation2] sm:$0xff]  ;;  %v37_v7 = vld [vmem:[#allocation5] sm:$0xff]  ;;  %s153_s0 = smov [#allocation7]  }
  0x1a   :  { %v41_v1 = vand.u32 2147483647, %v36_v0  ;;  %v38_v9 = vmax.f32 %v36_v0, 0.0  ;;  %v39_v10 = vmul.f32 %v37_v7, %v36_v0  ;;  %s68_s1 = sshll.u32 %s153_s0, 4  ;;  %s69_s1 = int_to_ptr.vmem [resolvable:$true] %s68_s1 }
  0x1b   :  { %s125_s19 = scalar_lea.vmem %s69_s1, 16  ;;  %s129_s20 = scalar_lea.vmem %s69_s1, 32 }
  0x1c   :  { %v42_v2 = vsub.f32 0.0, %v41_v1  ;;  %v40_v14 = vsub.f32 %v38_v9, %v39_v10  ;;  %p126_p10 = scmp.ne.s32.totalorder %s69_s1, %s125_s19  ;;  %p130_p11 = scmp.lt.s32.totalorder %s69_s1, %s69_s1 }
  0x1d   :  { %p131_p12 = scmp.lt.s32.totalorder %s129_s20, %s125_s19 }
  0x1e   :  { %v43_v3 = vmul.f32 1.442695, %v42_v2 }
  0x1f   :  { %p132_p13 = por %p131_p12, %p130_p11 }
  0x20   :  { %81 = vpow2.f32 %v43_v3 }
  0x21   :  { %p133_p0 = pnand %p132_p13, %p126_p10 }
  0x2d   :  { %v82_v4 = vpop.eup %81 }
  0x2e   :  { %v45_v5 = vadd.f32 1.0, %v82_v4  ;;  %v48_v6 = vmul.f32 -0.5, %v82_v4  ;;  %v51_v11 = vand.u32 2147483647, %v82_v4 }
  0x30   :  { %83 = vlog2.f32 %v45_v5  ;;  %v49_v8 = vadd.f32 1.0, %v48_v6  ;;  %vm52_vm0 = vcmp.lt.f32.partialorder %v51_v11, 0.0004427343 }
  0x32   :  { %v50_v12 = vmul.f32 %v82_v4, %v49_v8 }
  0x3d   :  { %v84_v13 = vpop.eup %83 }
  0x3e   :  { %v47_v15 = vmul.f32 0.6931472, %v84_v13 }
  0x40   :  { %v53_v16 = vsel %vm52_vm0, %v50_v12, %v47_v15 }
  0x41   :  { %v54_v17 = vadd.f32 %v53_v16, %v40_v14 }
  0x43   :  { %v55_v18 = vrot.slane %v54_v17, 4 }
  0x45   :  { %v56_v19 = vadd.f32 %v55_v18, %v54_v17 }
  0x47   :  { %v57_v20 = vrot.slane %v56_v19, 2 }
  0x49   :  { %v58_v21 = vadd.f32 %v57_v20, %v56_v19 }
  0x4b   :  { %v59_v22 = vrot.slane %v58_v21, 1 }
  0x4d   :  { %v60_v23 = vadd.f32 %v59_v22, %v58_v21 }
  0x4f   :  { %61 = vst [vmem:[#allocation7] sm:$0x1] %v60_v23 }
  0x50   :  { %136 = shalt.err (!%p133_p0)
}
  0x51   :  { %71 = dma.vmem_to_hbm [thread:$0]  %s69_s1, 16, %s180_s2, [#allocation4]  }
  0x52   :  { %149 = dma.done.wait [#allocation4], 16  }
  0x53   :  { %150 = vsyncadd [#allocation4], 4294967280 }
  0x54   :  { %75 = vsyncpa [#allocation3], 1 }
  0x55   :  { %76 = vsyncpa [#allocation6], 1 }
  0x56   :  { %77 = vsyncpa [#allocation4], 1 }

</bundles_post_ra>
